<compile_context>
chip_gen: v7x
topology: tpu7x:2x2x1
jax: 0.10.0
libtpu: 0.0.40
codegen_flags: <defaults>
</compile_context>

<pallas_src>
import jax
import jax.numpy as jnp
from jax.experimental import pallas as pl
from jax.experimental.pallas import tpu as pltpu


def _lstm_fc_kernel(ids_ref, vol_ref, emb_proj_ref, wvol_ref, whh_ref,
                    fcw_ref, fcb_ref, out_ref):
    # ids_ref      : (T*Bp, 1) int32  token ids, time-major, batch-padded
    # vol_ref      : (T*Bp, 1) f32    volume, time-major, batch-padded
    # emb_proj_ref : (V, 4H)   f32    emb @ wih[:, :E].T + bias, i/f/o cols *0.5
    # wvol_ref     : (1, 4H)   f32    volume column of wih, i/f/o cols *0.5
    # whh_ref      : (H, 4H)   f32    whh.T, i/f/o cols *0.5
    # fcw_ref      : (H, Op)   f32    fc weight.T, lane-padded
    # fcb_ref      : (1, Op)   f32    fc bias, lane-padded
    # out_ref      : (Bp, Op)  f32    sigmoid(fc(h_T)), unmasked vreg store
    Bp = out_ref.shape[0]
    TB = ids_ref.shape[0]
    T = TB // Bp
    V = emb_proj_ref.shape[0]
    H = whh_ref.shape[0]

    # ---- fused embedding + input projection: one-hot (TB,V) @ (V,4H) on MXU -
    ids = ids_ref[...]                                               # (TB, 1)
    onehot = (ids == jax.lax.broadcasted_iota(jnp.int32, (TB, V), 1)
              ).astype(jnp.float32)                                  # (TB, V)
    x_proj = (jnp.dot(onehot, emb_proj_ref[...],
                      preferred_element_type=jnp.float32)
              + vol_ref[...] * wvol_ref[...])                        # (TB, 4H)

    whh = whh_ref[...]
    h = jnp.zeros((Bp, H), jnp.float32)
    c = jnp.zeros((Bp, H), jnp.float32)

    # ---- recurrence: one MXU push + one full-vreg tanh per step -------------
    # sigmoid(x) = 0.5 * tanh(x/2) + 0.5 ; the i/f/o lanes already hold x/2.
    for t in range(T):
        gates = x_proj[t * Bp:(t + 1) * Bp, :] + jnp.dot(
            h, whh, preferred_element_type=jnp.float32)              # (Bp, 4H)
        tg = jnp.tanh(gates)
        i_g = 0.5 * tg[:, 0 * H:1 * H] + 0.5
        f_g = 0.5 * tg[:, 1 * H:2 * H] + 0.5
        g_g = tg[:, 2 * H:3 * H]
        o_g = 0.5 * tg[:, 3 * H:4 * H] + 0.5
        c = f_g * c + i_g * g_g
        h = o_g * jnp.tanh(c)

    # ---- final linear + sigmoid (lane-padded, unmasked store) ---------------
    logits = (jnp.dot(h, fcw_ref[...], preferred_element_type=jnp.float32)
              + fcb_ref[...])                                        # (Bp, Op)
    out_ref[...] = jax.nn.sigmoid(logits)


def prepare_params(params):
    """One-time parameter preprocessing (hoisted out of the per-call path)."""
    emb = params["embedding"].astype(jnp.float32)     # (V, E)
    wih = params["w_ih"].astype(jnp.float32)          # (4H, E+1) PyTorch layout
    whh = params["w_hh"].astype(jnp.float32)          # (4H, H)
    bias = (params["b_ih"] + params["b_hh"]).astype(jnp.float32)   # (4H,)
    fc_w = params["fc_w"].astype(jnp.float32)         # (O, H)
    fc_b = params["fc_b"].astype(jnp.float32)         # (O,)

    V, E = emb.shape
    H = whh.shape[1]
    O = fc_w.shape[0]
    Op = ((O + 127) // 128) * 128

    # 0.5 pre-scale on the i/f/o gate lanes only (gate order [i, f, g, o]).
    scale = jnp.concatenate([jnp.full((2 * H,), 0.5, jnp.float32),
                             jnp.ones((H,), jnp.float32),
                             jnp.full((H,), 0.5, jnp.float32)])       # (4H,)

    emb_proj = (emb @ wih[:, :E].T + bias[None, :]) * scale[None, :]  # (V, 4H)
    w_vol = (wih[:, E] * scale)[None, :]                              # (1, 4H)
    whh_t = whh.T * scale[None, :]                                    # (H, 4H)
    fcw_p = jnp.pad(fc_w.T, ((0, 0), (0, Op - O)))                    # (H, Op)
    fcb_p = jnp.pad(fc_b, (0, Op - O))[None, :]                       # (1, Op)

    return {"emb_proj": emb_proj, "w_vol": w_vol, "whh_t": whh_t,
            "fcw_p": fcw_p, "fcb_p": fcb_p, "H": H, "O": O, "Op": Op}


def candle_lstm_forward(x_candle, x_volume, prepped):
    """Forward pass of CandleLSTM using preprocessed params.

    x_candle : (B, T) int32 token ids
    x_volume : (B, T) float32
    returns  : (B, O) float32 sigmoid probabilities
    """
    B, T = x_candle.shape
    O, Op = prepped["O"], prepped["Op"]
    Bp = ((B + 7) // 8) * 8                       # pad batch to sublane width

    # Only tiny (B,T) int/f32 tensors are re-laid out per call (time-major,
    # batch-padded, flattened) — no float activation tensor is materialized.
    ids = jnp.pad(x_candle.T.astype(jnp.int32), ((0, 0), (0, Bp - B)))
    vol = jnp.pad(x_volume.T.astype(jnp.float32), ((0, 0), (0, Bp - B)))
    ids2 = ids.reshape(T * Bp, 1)
    vol2 = vol.reshape(T * Bp, 1)

    vmem = pl.BlockSpec(memory_space=pltpu.MemorySpace.VMEM)
    out = pl.pallas_call(
        _lstm_fc_kernel,
        out_shape=jax.ShapeDtypeStruct((Bp, Op), jnp.float32),
        in_specs=[vmem] * 7,
        out_specs=vmem,
    )(ids2, vol2, prepped["emb_proj"], prepped["w_vol"], prepped["whh_t"],
      prepped["fcw_p"], prepped["fcb_p"])
    return out[:B, :O]


def _reference_forward(x_candle, x_volume, params):
    """Pure-JAX reference (mirrors the PyTorch forward)."""
    emb = params["embedding"]
    wih, whh = params["w_ih"], params["w_hh"]
    b = params["b_ih"] + params["b_hh"]
    fc_w, fc_b = params["fc_w"], params["fc_b"]
    H = whh.shape[1]

    x_emb = jnp.take(emb, x_candle, axis=0)
    x = jnp.concatenate([x_emb, x_volume[..., None]], axis=-1)    # (B, T, D)
    B = x.shape[0]

    def step(carry, x_t):
        h, c = carry
        gates = x_t @ wih.T + h @ whh.T + b
        i_g = jax.nn.sigmoid(gates[:, 0 * H:1 * H])
        f_g = jax.nn.sigmoid(gates[:, 1 * H:2 * H])
        g_g = jnp.tanh(gates[:, 2 * H:3 * H])
        o_g = jax.nn.sigmoid(gates[:, 3 * H:4 * H])
        c = f_g * c + i_g * g_g
        h = o_g * jnp.tanh(c)
        return (h, c), None

    h0 = jnp.zeros((B, H), jnp.float32)
    c0 = jnp.zeros((B, H), jnp.float32)
    (h_last, _), _ = jax.lax.scan(step, (h0, c0), jnp.transpose(x, (1, 0, 2)))
    return jax.nn.sigmoid(h_last @ fc_w.T + fc_b)


def init_params(key, vocab_size, embedding_dim, hidden_dim, output_dim):
    ks = jax.random.split(key, 7)
    D = embedding_dim + 1
    s = 0.1
    return {
        "embedding": s * jax.random.normal(ks[0], (vocab_size, embedding_dim), jnp.float32),
        "w_ih": s * jax.random.normal(ks[1], (4 * hidden_dim, D), jnp.float32),
        "w_hh": s * jax.random.normal(ks[2], (4 * hidden_dim, hidden_dim), jnp.float32),
        "b_ih": s * jax.random.normal(ks[3], (4 * hidden_dim,), jnp.float32),
        "b_hh": s * jax.random.normal(ks[4], (4 * hidden_dim,), jnp.float32),
        "fc_w": s * jax.random.normal(ks[5], (output_dim, hidden_dim), jnp.float32),
        "fc_b": s * jax.random.normal(ks[6], (output_dim,), jnp.float32),
    }


if __name__ == "__main__":
    # Small shapes consistent with the module's forward.
    vocab_size, embedding_dim, hidden_dim, output_dim = 32, 15, 32, 1
    batch, seq = 2, 8

    key = jax.random.PRNGKey(0)
    k_p, k_c, k_v = jax.random.split(key, 3)

    params = init_params(k_p, vocab_size, embedding_dim, hidden_dim, output_dim)
    x_candle = jax.random.randint(k_c, (batch, seq), 0, vocab_size, dtype=jnp.int32)
    x_volume = jax.random.uniform(k_v, (batch, seq), dtype=jnp.float32)

    prepped = jax.tree_util.tree_map(
        lambda x: jax.block_until_ready(x) if isinstance(x, jax.Array) else x,
        prepare_params(params))

    out = candle_lstm_forward(x_candle, x_volume, prepped)
    out = jax.block_until_ready(out)

    ref = jax.block_until_ready(_reference_forward(x_candle, x_volume, params))
    assert out.shape == (batch, output_dim)
    assert jnp.allclose(out, ref, atol=1e-5, rtol=1e-5)

    print("KERNEL_OK")
</pallas_src>

<mosaic_0001>
module attributes {stable_mosaic.version = 11 : i64} {
  func.func @_lstm_fc_kernel(%arg0: memref<64x1xi32, #tpu.memory_space<vmem>>, %arg1: memref<64x1xf32, #tpu.memory_space<vmem>>, %arg2: memref<32x128xf32, #tpu.memory_space<vmem>>, %arg3: memref<1x128xf32, #tpu.memory_space<vmem>>, %arg4: memref<32x128xf32, #tpu.memory_space<vmem>>, %arg5: memref<32x128xf32, #tpu.memory_space<vmem>>, %arg6: memref<1x128xf32, #tpu.memory_space<vmem>>, %arg7: memref<8x128xf32, #tpu.memory_space<vmem>>) attributes {dimension_semantics = [], scalar_prefetch = 0 : i64, scratch_operands = 0 : i64, tpu.core_type = #tpu.core_type<tc>} {
    %c0 = arith.constant 0 : index
    %c0_0 = arith.constant 0 : index
    %0 = vector.load %arg0[%c0, %c0_0] : memref<64x1xi32, #tpu.memory_space<vmem>>, vector<64x1xi32>
    %1 = tpu.iota {dimensions = array<i32: 1>} : vector<64x32xi32>
    %2 = vector.broadcast %0 : vector<64x1xi32> to vector<64x32xi32>
    %3 = arith.cmpi eq, %2, %1 : vector<64x32xi32>
    %4 = arith.extui %3 : vector<64x32xi1> to vector<64x32xi32>
    %5 = arith.sitofp %4 : vector<64x32xi32> to vector<64x32xf32>
    %c0_1 = arith.constant 0 : index
    %c0_2 = arith.constant 0 : index
    %6 = vector.load %arg2[%c0_1, %c0_2] : memref<32x128xf32, #tpu.memory_space<vmem>>, vector<32x128xf32>
    %cst = arith.constant dense<0.000000e+00> : vector<64x128xf32>
    %7 = tpu.matmul %5, %6, %cst {dimension_numbers = #tpu.dot_dimension_numbers<[1], [0], [0], [1], [0, 0, 1, 1], [], []>} : vector<64x32xf32>, vector<32x128xf32>, vector<64x128xf32> -> vector<64x128xf32>
    %c0_3 = arith.constant 0 : index
    %c0_4 = arith.constant 0 : index
    %8 = vector.load %arg1[%c0_3, %c0_4] : memref<64x1xf32, #tpu.memory_space<vmem>>, vector<64x1xf32>
    %c0_5 = arith.constant 0 : index
    %c0_6 = arith.constant 0 : index
    %9 = vector.load %arg3[%c0_5, %c0_6] : memref<1x128xf32, #tpu.memory_space<vmem>>, vector<1x128xf32>
    %10 = vector.broadcast %8 : vector<64x1xf32> to vector<64x128xf32>
    %11 = vector.broadcast %9 : vector<1x128xf32> to vector<64x128xf32>
    %12 = arith.mulf %10, %11 : vector<64x128xf32>
    %13 = arith.addf %7, %12 : vector<64x128xf32>
    %c0_7 = arith.constant 0 : index
    %c0_8 = arith.constant 0 : index
    %14 = vector.load %arg4[%c0_7, %c0_8] : memref<32x128xf32, #tpu.memory_space<vmem>>, vector<32x128xf32>
    %cst_9 = arith.constant 0.000000e+00 : f32
    %15 = vector.broadcast %cst_9 : f32 to vector<8x32xf32>
    %cst_10 = arith.constant 0.000000e+00 : f32
    %16 = vector.broadcast %cst_10 : f32 to vector<8x32xf32>
    %17 = vector.extract_strided_slice %13 {offsets = [0, 0], sizes = [8, 128], strides = [1, 1]} : vector<64x128xf32> to vector<8x128xf32>
    %cst_11 = arith.constant dense<0.000000e+00> : vector<8x128xf32>
    %18 = tpu.matmul %15, %14, %cst_11 {dimension_numbers = #tpu.dot_dimension_numbers<[1], [0], [0], [1], [0, 0, 1, 1], [], []>} : vector<8x32xf32>, vector<32x128xf32>, vector<8x128xf32> -> vector<8x128xf32>
    %19 = arith.addf %17, %18 : vector<8x128xf32>
    %20 = math.tanh %19 : vector<8x128xf32>
    %21 = vector.extract_strided_slice %20 {offsets = [0, 0], sizes = [8, 32], strides = [1, 1]} : vector<8x128xf32> to vector<8x32xf32>
    %cst_12 = arith.constant 5.000000e-01 : f32
    %22 = vector.broadcast %cst_12 : f32 to vector<8x32xf32>
    %23 = arith.mulf %22, %21 : vector<8x32xf32>
    %cst_13 = arith.constant 5.000000e-01 : f32
    %24 = vector.broadcast %cst_13 : f32 to vector<8x32xf32>
    %25 = arith.addf %23, %24 : vector<8x32xf32>
    %26 = vector.extract_strided_slice %20 {offsets = [0, 32], sizes = [8, 32], strides = [1, 1]} : vector<8x128xf32> to vector<8x32xf32>
    %cst_14 = arith.constant 5.000000e-01 : f32
    %27 = vector.broadcast %cst_14 : f32 to vector<8x32xf32>
    %28 = arith.mulf %27, %26 : vector<8x32xf32>
    %cst_15 = arith.constant 5.000000e-01 : f32
    %29 = vector.broadcast %cst_15 : f32 to vector<8x32xf32>
    %30 = arith.addf %28, %29 : vector<8x32xf32>
    %31 = vector.extract_strided_slice %20 {offsets = [0, 64], sizes = [8, 32], strides = [1, 1]} : vector<8x128xf32> to vector<8x32xf32>
    %32 = vector.extract_strided_slice %20 {offsets = [0, 96], sizes = [8, 32], strides = [1, 1]} : vector<8x128xf32> to vector<8x32xf32>
    %cst_16 = arith.constant 5.000000e-01 : f32
    %33 = vector.broadcast %cst_16 : f32 to vector<8x32xf32>
    %34 = arith.mulf %33, %32 : vector<8x32xf32>
    %cst_17 = arith.constant 5.000000e-01 : f32
    %35 = vector.broadcast %cst_17 : f32 to vector<8x32xf32>
    %36 = arith.addf %34, %35 : vector<8x32xf32>
    %37 = arith.mulf %30, %16 : vector<8x32xf32>
    %38 = arith.mulf %25, %31 : vector<8x32xf32>
    %39 = arith.addf %37, %38 : vector<8x32xf32>
    %40 = math.tanh %39 : vector<8x32xf32>
    %41 = arith.mulf %36, %40 : vector<8x32xf32>
    %42 = vector.extract_strided_slice %13 {offsets = [8, 0], sizes = [8, 128], strides = [1, 1]} : vector<64x128xf32> to vector<8x128xf32>
    %cst_18 = arith.constant dense<0.000000e+00> : vector<8x128xf32>
    %43 = tpu.matmul %41, %14, %cst_18 {dimension_numbers = #tpu.dot_dimension_numbers<[1], [0], [0], [1], [0, 0, 1, 1], [], []>} : vector<8x32xf32>, vector<32x128xf32>, vector<8x128xf32> -> vector<8x128xf32>
    %44 = arith.addf %42, %43 : vector<8x128xf32>
    %45 = math.tanh %44 : vector<8x128xf32>
    %46 = vector.extract_strided_slice %45 {offsets = [0, 0], sizes = [8, 32], strides = [1, 1]} : vector<8x128xf32> to vector<8x32xf32>
    %cst_19 = arith.constant 5.000000e-01 : f32
    %47 = vector.broadcast %cst_19 : f32 to vector<8x32xf32>
    %48 = arith.mulf %47, %46 : vector<8x32xf32>
    %cst_20 = arith.constant 5.000000e-01 : f32
    %49 = vector.broadcast %cst_20 : f32 to vector<8x32xf32>
    %50 = arith.addf %48, %49 : vector<8x32xf32>
    %51 = vector.extract_strided_slice %45 {offsets = [0, 32], sizes = [8, 32], strides = [1, 1]} : vector<8x128xf32> to vector<8x32xf32>
    %cst_21 = arith.constant 5.000000e-01 : f32
    %52 = vector.broadcast %cst_21 : f32 to vector<8x32xf32>
    %53 = arith.mulf %52, %51 : vector<8x32xf32>
    %cst_22 = arith.constant 5.000000e-01 : f32
    %54 = vector.broadcast %cst_22 : f32 to vector<8x32xf32>
    %55 = arith.addf %53, %54 : vector<8x32xf32>
    %56 = vector.extract_strided_slice %45 {offsets = [0, 64], sizes = [8, 32], strides = [1, 1]} : vector<8x128xf32> to vector<8x32xf32>
    %57 = vector.extract_strided_slice %45 {offsets = [0, 96], sizes = [8, 32], strides = [1, 1]} : vector<8x128xf32> to vector<8x32xf32>
    %cst_23 = arith.constant 5.000000e-01 : f32
    %58 = vector.broadcast %cst_23 : f32 to vector<8x32xf32>
    %59 = arith.mulf %58, %57 : vector<8x32xf32>
    %cst_24 = arith.constant 5.000000e-01 : f32
    %60 = vector.broadcast %cst_24 : f32 to vector<8x32xf32>
    %61 = arith.addf %59, %60 : vector<8x32xf32>
    %62 = arith.mulf %55, %39 : vector<8x32xf32>
    %63 = arith.mulf %50, %56 : vector<8x32xf32>
    %64 = arith.addf %62, %63 : vector<8x32xf32>
    %65 = math.tanh %64 : vector<8x32xf32>
    %66 = arith.mulf %61, %65 : vector<8x32xf32>
    %67 = vector.extract_strided_slice %13 {offsets = [16, 0], sizes = [8, 128], strides = [1, 1]} : vector<64x128xf32> to vector<8x128xf32>
    %cst_25 = arith.constant dense<0.000000e+00> : vector<8x128xf32>
    %68 = tpu.matmul %66, %14, %cst_25 {dimension_numbers = #tpu.dot_dimension_numbers<[1], [0], [0], [1], [0, 0, 1, 1], [], []>} : vector<8x32xf32>, vector<32x128xf32>, vector<8x128xf32> -> vector<8x128xf32>
    %69 = arith.addf %67, %68 : vector<8x128xf32>
    %70 = math.tanh %69 : vector<8x128xf32>
    %71 = vector.extract_strided_slice %70 {offsets = [0, 0], sizes = [8, 32], strides = [1, 1]} : vector<8x128xf32> to vector<8x32xf32>
    %cst_26 = arith.constant 5.000000e-01 : f32
    %72 = vector.broadcast %cst_26 : f32 to vector<8x32xf32>
    %73 = arith.mulf %72, %71 : vector<8x32xf32>
    %cst_27 = arith.constant 5.000000e-01 : f32
    %74 = vector.broadcast %cst_27 : f32 to vector<8x32xf32>
    %75 = arith.addf %73, %74 : vector<8x32xf32>
    %76 = vector.extract_strided_slice %70 {offsets = [0, 32], sizes = [8, 32], strides = [1, 1]} : vector<8x128xf32> to vector<8x32xf32>
    %cst_28 = arith.constant 5.000000e-01 : f32
    %77 = vector.broadcast %cst_28 : f32 to vector<8x32xf32>
    %78 = arith.mulf %77, %76 : vector<8x32xf32>
    %cst_29 = arith.constant 5.000000e-01 : f32
    %79 = vector.broadcast %cst_29 : f32 to vector<8x32xf32>
    %80 = arith.addf %78, %79 : vector<8x32xf32>
    %81 = vector.extract_strided_slice %70 {offsets = [0, 64], sizes = [8, 32], strides = [1, 1]} : vector<8x128xf32> to vector<8x32xf32>
    %82 = vector.extract_strided_slice %70 {offsets = [0, 96], sizes = [8, 32], strides = [1, 1]} : vector<8x128xf32> to vector<8x32xf32>
    %cst_30 = arith.constant 5.000000e-01 : f32
    %83 = vector.broadcast %cst_30 : f32 to vector<8x32xf32>
    %84 = arith.mulf %83, %82 : vector<8x32xf32>
    %cst_31 = arith.constant 5.000000e-01 : f32
    %85 = vector.broadcast %cst_31 : f32 to vector<8x32xf32>
    %86 = arith.addf %84, %85 : vector<8x32xf32>
    %87 = arith.mulf %80, %64 : vector<8x32xf32>
    %88 = arith.mulf %75, %81 : vector<8x32xf32>
    %89 = arith.addf %87, %88 : vector<8x32xf32>
    %90 = math.tanh %89 : vector<8x32xf32>
    %91 = arith.mulf %86, %90 : vector<8x32xf32>
    %92 = vector.extract_strided_slice %13 {offsets = [24, 0], sizes = [8, 128], strides = [1, 1]} : vector<64x128xf32> to vector<8x128xf32>
    %cst_32 = arith.constant dense<0.000000e+00> : vector<8x128xf32>
    %93 = tpu.matmul %91, %14, %cst_32 {dimension_numbers = #tpu.dot_dimension_numbers<[1], [0], [0], [1], [0, 0, 1, 1], [], []>} : vector<8x32xf32>, vector<32x128xf32>, vector<8x128xf32> -> vector<8x128xf32>
    %94 = arith.addf %92, %93 : vector<8x128xf32>
    %95 = math.tanh %94 : vector<8x128xf32>
    %96 = vector.extract_strided_slice %95 {offsets = [0, 0], sizes = [8, 32], strides = [1, 1]} : vector<8x128xf32> to vector<8x32xf32>
    %cst_33 = arith.constant 5.000000e-01 : f32
    %97 = vector.broadcast %cst_33 : f32 to vector<8x32xf32>
    %98 = arith.mulf %97, %96 : vector<8x32xf32>
    %cst_34 = arith.constant 5.000000e-01 : f32
    %99 = vector.broadcast %cst_34 : f32 to vector<8x32xf32>
    %100 = arith.addf %98, %99 : vector<8x32xf32>
    %101 = vector.extract_strided_slice %95 {offsets = [0, 32], sizes = [8, 32], strides = [1, 1]} : vector<8x128xf32> to vector<8x32xf32>
    %cst_35 = arith.constant 5.000000e-01 : f32
    %102 = vector.broadcast %cst_35 : f32 to vector<8x32xf32>
    %103 = arith.mulf %102, %101 : vector<8x32xf32>
    %cst_36 = arith.constant 5.000000e-01 : f32
    %104 = vector.broadcast %cst_36 : f32 to vector<8x32xf32>
    %105 = arith.addf %103, %104 : vector<8x32xf32>
    %106 = vector.extract_strided_slice %95 {offsets = [0, 64], sizes = [8, 32], strides = [1, 1]} : vector<8x128xf32> to vector<8x32xf32>
    %107 = vector.extract_strided_slice %95 {offsets = [0, 96], sizes = [8, 32], strides = [1, 1]} : vector<8x128xf32> to vector<8x32xf32>
    %cst_37 = arith.constant 5.000000e-01 : f32
    %108 = vector.broadcast %cst_37 : f32 to vector<8x32xf32>
    %109 = arith.mulf %108, %107 : vector<8x32xf32>
    %cst_38 = arith.constant 5.000000e-01 : f32
    %110 = vector.broadcast %cst_38 : f32 to vector<8x32xf32>
    %111 = arith.addf %109, %110 : vector<8x32xf32>
    %112 = arith.mulf %105, %89 : vector<8x32xf32>
    %113 = arith.mulf %100, %106 : vector<8x32xf32>
    %114 = arith.addf %112, %113 : vector<8x32xf32>
    %115 = math.tanh %114 : vector<8x32xf32>
    %116 = arith.mulf %111, %115 : vector<8x32xf32>
    %117 = vector.extract_strided_slice %13 {offsets = [32, 0], sizes = [8, 128], strides = [1, 1]} : vector<64x128xf32> to vector<8x128xf32>
    %cst_39 = arith.constant dense<0.000000e+00> : vector<8x128xf32>
    %118 = tpu.matmul %116, %14, %cst_39 {dimension_numbers = #tpu.dot_dimension_numbers<[1], [0], [0], [1], [0, 0, 1, 1], [], []>} : vector<8x32xf32>, vector<32x128xf32>, vector<8x128xf32> -> vector<8x128xf32>
    %119 = arith.addf %117, %118 : vector<8x128xf32>
    %120 = math.tanh %119 : vector<8x128xf32>
    %121 = vector.extract_strided_slice %120 {offsets = [0, 0], sizes = [8, 32], strides = [1, 1]} : vector<8x128xf32> to vector<8x32xf32>
    %cst_40 = arith.constant 5.000000e-01 : f32
    %122 = vector.broadcast %cst_40 : f32 to vector<8x32xf32>
    %123 = arith.mulf %122, %121 : vector<8x32xf32>
    %cst_41 = arith.constant 5.000000e-01 : f32
    %124 = vector.broadcast %cst_41 : f32 to vector<8x32xf32>
    %125 = arith.addf %123, %124 : vector<8x32xf32>
    %126 = vector.extract_strided_slice %120 {offsets = [0, 32], sizes = [8, 32], strides = [1, 1]} : vector<8x128xf32> to vector<8x32xf32>
    %cst_42 = arith.constant 5.000000e-01 : f32
    %127 = vector.broadcast %cst_42 : f32 to vector<8x32xf32>
    %128 = arith.mulf %127, %126 : vector<8x32xf32>
    %cst_43 = arith.constant 5.000000e-01 : f32
    %129 = vector.broadcast %cst_43 : f32 to vector<8x32xf32>
    %130 = arith.addf %128, %129 : vector<8x32xf32>
    %131 = vector.extract_strided_slice %120 {offsets = [0, 64], sizes = [8, 32], strides = [1, 1]} : vector<8x128xf32> to vector<8x32xf32>
    %132 = vector.extract_strided_slice %120 {offsets = [0, 96], sizes = [8, 32], strides = [1, 1]} : vector<8x128xf32> to vector<8x32xf32>
    %cst_44 = arith.constant 5.000000e-01 : f32
    %133 = vector.broadcast %cst_44 : f32 to vector<8x32xf32>
    %134 = arith.mulf %133, %132 : vector<8x32xf32>
    %cst_45 = arith.constant 5.000000e-01 : f32
    %135 = vector.broadcast %cst_45 : f32 to vector<8x32xf32>
    %136 = arith.addf %134, %135 : vector<8x32xf32>
    %137 = arith.mulf %130, %114 : vector<8x32xf32>
    %138 = arith.mulf %125, %131 : vector<8x32xf32>
    %139 = arith.addf %137, %138 : vector<8x32xf32>
    %140 = math.tanh %139 : vector<8x32xf32>
    %141 = arith.mulf %136, %140 : vector<8x32xf32>
    %142 = vector.extract_strided_slice %13 {offsets = [40, 0], sizes = [8, 128], strides = [1, 1]} : vector<64x128xf32> to vector<8x128xf32>
    %cst_46 = arith.constant dense<0.000000e+00> : vector<8x128xf32>
    %143 = tpu.matmul %141, %14, %cst_46 {dimension_numbers = #tpu.dot_dimension_numbers<[1], [0], [0], [1], [0, 0, 1, 1], [], []>} : vector<8x32xf32>, vector<32x128xf32>, vector<8x128xf32> -> vector<8x128xf32>
    %144 = arith.addf %142, %143 : vector<8x128xf32>
    %145 = math.tanh %144 : vector<8x128xf32>
    %146 = vector.extract_strided_slice %145 {offsets = [0, 0], sizes = [8, 32], strides = [1, 1]} : vector<8x128xf32> to vector<8x32xf32>
    %cst_47 = arith.constant 5.000000e-01 : f32
    %147 = vector.broadcast %cst_47 : f32 to vector<8x32xf32>
    %148 = arith.mulf %147, %146 : vector<8x32xf32>
    %cst_48 = arith.constant 5.000000e-01 : f32
    %149 = vector.broadcast %cst_48 : f32 to vector<8x32xf32>
    %150 = arith.addf %148, %149 : vector<8x32xf32>
    %151 = vector.extract_strided_slice %145 {offsets = [0, 32], sizes = [8, 32], strides = [1, 1]} : vector<8x128xf32> to vector<8x32xf32>
    %cst_49 = arith.constant 5.000000e-01 : f32
    %152 = vector.broadcast %cst_49 : f32 to vector<8x32xf32>
    %153 = arith.mulf %152, %151 : vector<8x32xf32>
    %cst_50 = arith.constant 5.000000e-01 : f32
    %154 = vector.broadcast %cst_50 : f32 to vector<8x32xf32>
    %155 = arith.addf %153, %154 : vector<8x32xf32>
    %156 = vector.extract_strided_slice %145 {offsets = [0, 64], sizes = [8, 32], strides = [1, 1]} : vector<8x128xf32> to vector<8x32xf32>
    %157 = vector.extract_strided_slice %145 {offsets = [0, 96], sizes = [8, 32], strides = [1, 1]} : vector<8x128xf32> to vector<8x32xf32>
    %cst_51 = arith.constant 5.000000e-01 : f32
    %158 = vector.broadcast %cst_51 : f32 to vector<8x32xf32>
    %159 = arith.mulf %158, %157 : vector<8x32xf32>
    %cst_52 = arith.constant 5.000000e-01 : f32
    %160 = vector.broadcast %cst_52 : f32 to vector<8x32xf32>
    %161 = arith.addf %159, %160 : vector<8x32xf32>
    %162 = arith.mulf %155, %139 : vector<8x32xf32>
    %163 = arith.mulf %150, %156 : vector<8x32xf32>
    %164 = arith.addf %162, %163 : vector<8x32xf32>
    %165 = math.tanh %164 : vector<8x32xf32>
    %166 = arith.mulf %161, %165 : vector<8x32xf32>
    %167 = vector.extract_strided_slice %13 {offsets = [48, 0], sizes = [8, 128], strides = [1, 1]} : vector<64x128xf32> to vector<8x128xf32>
    %cst_53 = arith.constant dense<0.000000e+00> : vector<8x128xf32>
    %168 = tpu.matmul %166, %14, %cst_53 {dimension_numbers = #tpu.dot_dimension_numbers<[1], [0], [0], [1], [0, 0, 1, 1], [], []>} : vector<8x32xf32>, vector<32x128xf32>, vector<8x128xf32> -> vector<8x128xf32>
    %169 = arith.addf %167, %168 : vector<8x128xf32>
    %170 = math.tanh %169 : vector<8x128xf32>
    %171 = vector.extract_strided_slice %170 {offsets = [0, 0], sizes = [8, 32], strides = [1, 1]} : vector<8x128xf32> to vector<8x32xf32>
    %cst_54 = arith.constant 5.000000e-01 : f32
    %172 = vector.broadcast %cst_54 : f32 to vector<8x32xf32>
    %173 = arith.mulf %172, %171 : vector<8x32xf32>
    %cst_55 = arith.constant 5.000000e-01 : f32
    %174 = vector.broadcast %cst_55 : f32 to vector<8x32xf32>
    %175 = arith.addf %173, %174 : vector<8x32xf32>
    %176 = vector.extract_strided_slice %170 {offsets = [0, 32], sizes = [8, 32], strides = [1, 1]} : vector<8x128xf32> to vector<8x32xf32>
    %cst_56 = arith.constant 5.000000e-01 : f32
    %177 = vector.broadcast %cst_56 : f32 to vector<8x32xf32>
    %178 = arith.mulf %177, %176 : vector<8x32xf32>
    %cst_57 = arith.constant 5.000000e-01 : f32
    %179 = vector.broadcast %cst_57 : f32 to vector<8x32xf32>
    %180 = arith.addf %178, %179 : vector<8x32xf32>
    %181 = vector.extract_strided_slice %170 {offsets = [0, 64], sizes = [8, 32], strides = [1, 1]} : vector<8x128xf32> to vector<8x32xf32>
    %182 = vector.extract_strided_slice %170 {offsets = [0, 96], sizes = [8, 32], strides = [1, 1]} : vector<8x128xf32> to vector<8x32xf32>
    %cst_58 = arith.constant 5.000000e-01 : f32
    %183 = vector.broadcast %cst_58 : f32 to vector<8x32xf32>
    %184 = arith.mulf %183, %182 : vector<8x32xf32>
    %cst_59 = arith.constant 5.000000e-01 : f32
    %185 = vector.broadcast %cst_59 : f32 to vector<8x32xf32>
    %186 = arith.addf %184, %185 : vector<8x32xf32>
    %187 = arith.mulf %180, %164 : vector<8x32xf32>
    %188 = arith.mulf %175, %181 : vector<8x32xf32>
    %189 = arith.addf %187, %188 : vector<8x32xf32>
    %190 = math.tanh %189 : vector<8x32xf32>
    %191 = arith.mulf %186, %190 : vector<8x32xf32>
    %192 = vector.extract_strided_slice %13 {offsets = [56, 0], sizes = [8, 128], strides = [1, 1]} : vector<64x128xf32> to vector<8x128xf32>
    %cst_60 = arith.constant dense<0.000000e+00> : vector<8x128xf32>
    %193 = tpu.matmul %191, %14, %cst_60 {dimension_numbers = #tpu.dot_dimension_numbers<[1], [0], [0], [1], [0, 0, 1, 1], [], []>} : vector<8x32xf32>, vector<32x128xf32>, vector<8x128xf32> -> vector<8x128xf32>
    %194 = arith.addf %192, %193 : vector<8x128xf32>
    %195 = math.tanh %194 : vector<8x128xf32>
    %196 = vector.extract_strided_slice %195 {offsets = [0, 0], sizes = [8, 32], strides = [1, 1]} : vector<8x128xf32> to vector<8x32xf32>
    %cst_61 = arith.constant 5.000000e-01 : f32
    %197 = vector.broadcast %cst_61 : f32 to vector<8x32xf32>
    %198 = arith.mulf %197, %196 : vector<8x32xf32>
    %cst_62 = arith.constant 5.000000e-01 : f32
    %199 = vector.broadcast %cst_62 : f32 to vector<8x32xf32>
    %200 = arith.addf %198, %199 : vector<8x32xf32>
    %201 = vector.extract_strided_slice %195 {offsets = [0, 32], sizes = [8, 32], strides = [1, 1]} : vector<8x128xf32> to vector<8x32xf32>
    %cst_63 = arith.constant 5.000000e-01 : f32
    %202 = vector.broadcast %cst_63 : f32 to vector<8x32xf32>
    %203 = arith.mulf %202, %201 : vector<8x32xf32>
    %cst_64 = arith.constant 5.000000e-01 : f32
    %204 = vector.broadcast %cst_64 : f32 to vector<8x32xf32>
    %205 = arith.addf %203, %204 : vector<8x32xf32>
    %206 = vector.extract_strided_slice %195 {offsets = [0, 64], sizes = [8, 32], strides = [1, 1]} : vector<8x128xf32> to vector<8x32xf32>
    %207 = vector.extract_strided_slice %195 {offsets = [0, 96], sizes = [8, 32], strides = [1, 1]} : vector<8x128xf32> to vector<8x32xf32>
    %cst_65 = arith.constant 5.000000e-01 : f32
    %208 = vector.broadcast %cst_65 : f32 to vector<8x32xf32>
    %209 = arith.mulf %208, %207 : vector<8x32xf32>
    %cst_66 = arith.constant 5.000000e-01 : f32
    %210 = vector.broadcast %cst_66 : f32 to vector<8x32xf32>
    %211 = arith.addf %209, %210 : vector<8x32xf32>
    %212 = arith.mulf %205, %189 : vector<8x32xf32>
    %213 = arith.mulf %200, %206 : vector<8x32xf32>
    %214 = arith.addf %212, %213 : vector<8x32xf32>
    %215 = math.tanh %214 : vector<8x32xf32>
    %216 = arith.mulf %211, %215 : vector<8x32xf32>
    %c0_67 = arith.constant 0 : index
    %c0_68 = arith.constant 0 : index
    %217 = vector.load %arg5[%c0_67, %c0_68] : memref<32x128xf32, #tpu.memory_space<vmem>>, vector<32x128xf32>
    %cst_69 = arith.constant dense<0.000000e+00> : vector<8x128xf32>
    %218 = tpu.matmul %216, %217, %cst_69 {dimension_numbers = #tpu.dot_dimension_numbers<[1], [0], [0], [1], [0, 0, 1, 1], [], []>} : vector<8x32xf32>, vector<32x128xf32>, vector<8x128xf32> -> vector<8x128xf32>
    %c0_70 = arith.constant 0 : index
    %c0_71 = arith.constant 0 : index
    %219 = vector.load %arg6[%c0_70, %c0_71] : memref<1x128xf32, #tpu.memory_space<vmem>>, vector<1x128xf32>
    %220 = vector.broadcast %219 : vector<1x128xf32> to vector<8x128xf32>
    %221 = arith.addf %218, %220 : vector<8x128xf32>
    %222 = arith.negf %221 : vector<8x128xf32>
    %223 = math.exp %222 : vector<8x128xf32>
    %cst_72 = arith.constant 1.000000e+00 : f32
    %224 = vector.broadcast %cst_72 : f32 to vector<8x128xf32>
    %225 = arith.addf %224, %223 : vector<8x128xf32>
    %226 = arith.divf %224, %225 : vector<8x128xf32>
    %c0_73 = arith.constant 0 : index
    %c0_74 = arith.constant 0 : index
    %227 = vector.load %arg7[%c0_73, %c0_74] : memref<8x128xf32, #tpu.memory_space<vmem>>, vector<8x128xf32>
    tpu.vector_store %arg7[%c0_73, %c0_74], %226 {strides = array<i32>} : memref<8x128xf32, #tpu.memory_space<vmem>>, vector<8x128xf32>,
    return
  }
}

</mosaic_0001>

<bundles_post_ra>
// kernel: tpu_custom_call.1
= control target key start
LH: loop header
LB: loop body
LE: loop exit
PB: predicated region body
PF: predicated region fallthrough
CT: control target
= control target key end

     0   :  { %v1493_v2 = vmov 0   ;;  %v1494_v7 = vmov 0.0|0.0   ;;  %s1791_s0 = inlined_call_operand.vmem [shape: s32[64,1], index: 0, kind: input, shape index: {}]   ;;  %s1792_s1 = inlined_call_operand.vmem [shape: f32[64,1], index: 1, kind: input, shape index: {}]   ;;  %s1793_s2 = inlined_call_operand.vmem [shape: f32[32,128], index: 2, kind: input, shape index: {}]   ;;  %s1794_s3 = inlined_call_operand.vmem [shape: f32[1,128], index: 3, kind: input, shape index: {}]   ;;  %s1795_s4 = inlined_call_operand.vmem [shape: f32[32,128], index: 4, kind: input, shape index: {}]   ;;  %s1796_s5 = inlined_call_operand.vmem [shape: f32[32,128], index: 5, kind: input, shape index: {}]   ;;  %s1797_s6 = inlined_call_operand.vmem [shape: f32[1,128], index: 6, kind: input, shape index: {}]   ;;  %s1798_s7 = inlined_call_operand.hbm [shape: f32[8,128], index: 7, kind: output, shape index: {}]  }
   0x1   :  { %v27_v0 = vld [vmem:[%s1791_s0] sm:$0xff]  ;;  %1431 = vset.pattern.permute.xlu0 %v1493_v2  ;;  %v86_v3 = vld [vmem:[%s1793_s2 + $0x8] sm:$0xff]  ;;  %1432 = vset.pattern.permute.xlu1 %v1493_v2  ;;  %v87_v9 = vld [vmem:[%s1793_s2 + $0x10] sm:$0xff] }
   0x2   :  { %v85_v1 = vld [vmem:[%s1793_s2] sm:$0xff]  ;;  %v283_v5 = vld [vmem:[%s1795_s4 + $0x8] sm:$0xff]  ;;  %38 = vperm.xlu0 %1431, %v27_v0   ;;  %1370 = vmatprep.subr.bf16.mxu1 %v1494_v7  ;;  %v88_v10 = vld [vmem:[%s1793_s2 + $0x18] sm:$0xff] }
   0x3   :  { %v282_v4 = vld [vmem:[%s1795_s4] sm:$0xff]  ;;  %v1362_v6 = vpack.c.bf16 %v86_v3, %v85_v1 }
   0x4   :  { %v1556_v8 = vpack.c.bf16 %v283_v5, %v282_v4 }
   0x5   :  { %12 = vsyncpa [#allocation3], 0  ;;  %v28_v11 = vld [vmem:[%s1791_s0 + $0x8] sm:$0xff]  ;;  %v1366_v12 = vpack.c.bf16 %v88_v10, %v87_v9  ;;  %1363 = vmatprep.subr.bf16.mxu0 %v1362_v6  ;;  %v284_v13 = vld [vmem:[%s1795_s4 + $0x10] sm:$0xff]  ;;  %vm1495_vm0 = vmmov 0   ;;  %v1496_v17 = vmov 0.0   ;;  %v35_v18 = vlaneseq }
   0x6   :  { %1372 = vmatpush3.bf16.msra.mxu1 %v1556_v8  ;;  %v285_v14 = vld [vmem:[%s1795_s4 + $0x18] sm:$0xff]  ;;  %1365 = vmatpush3.bf16.msra.mxu0 %v1362_v6  ;;  %v89_v16 = vld [vmem:[%s1792_s1] sm:$0xff]  ;;  %vm152_vm1 = vcmask 261120   ;;  %s1497_s23 = smov 64   ;;  %s1498_s24 = smov 32   ;;  %v90_v42 = vld [vmem:[%s1792_s1 + $0x8] sm:$0xff] }
   0x7   :  { %1373 = vmatprep.subr.bf16.mxu1 %v1494_v7  ;;  %v1575_v15 = vpack.c.bf16 %v285_v14, %v284_v13  ;;  %41 = vperm.xlu0 %1431, %v28_v11   ;;  %v1592_v19 = vand.u32 127, %v35_v18  ;;  %v1607_v26 = vld [vmem:[%s1794_s3] ss:$0 sm:$0xff]  ;;  %v29_v57 = vld [vmem:[%s1791_s0 + $0x10] sm:$0xff]  ;;  %v30_v0 = vld [vmem:[%s1791_s0 + $0x18] sm:$0xff] }
   0x8   :  { %1367 = vmatprep.subr.bf16.mxu0 %v1366_v12  ;;  %1271 = vmatprep.mubr.msk.f32.mxu1 %vm1495_vm0, %v1496_v17  ;;  %v31_v58 = vld [vmem:[%s1791_s0 + $0x20] sm:$0xff]  ;;  %v33_v59 = vld [vmem:[%s1791_s0 + $0x30] sm:$0xff]  ;;  %v32_v3 = vld [vmem:[%s1791_s0 + $0x28] sm:$0xff] }
   0x9   :  { %100 = vperm.xlu1 %1432, %v89_v16   ;;  %v34_v4 = vld [vmem:[%s1791_s0 + $0x38] sm:$0xff]  ;;  %v91_v5 = vld [vmem:[%s1792_s1 + $0x10] sm:$0xff] }
   0xa   :  { %1375 = vmatpush3.bf16.msra.mxu1 %v1575_v15  ;;  %1369 = vmatpush3.bf16.msra.mxu0 %v1366_v12 }
   0xb   :  { %1376 = vmatprep.subr.bf16.mxu1 %v1494_v7  ;;  %1382 = vmatprep.subr.bf16.mxu0 %v1494_v7 }
   0xd   :  { %1272 = vmatmul.mubr.f32.vlgmr.msra.gmra.mrb[0].mxu1 %v1496_v17 }
   0xe   :  { %1378 = vmatpush3.bf16.msra.mxu1 %v1556_v8  ;;  %1282 = vmatprep.mubr.msk.f32.mxu1 %vm1495_vm0, %v1496_v17 }
   0xf   :  { %1379 = vmatprep.subr.bf16.mxu1 %v1494_v7 }
  0x12   :  { %1381 = vmatpush3.bf16.msra.mxu1 %v1575_v15 }
  0x13   :  { %1388 = vmatprep.subr.bf16.mxu1 %v1494_v7 }
  0x81   :  { %v39_v20 = vpop.permute.xlu0 %38 }
  0x82   :  { %vm61_vm2 = vcmp.eq.s32.totalorder %v39_v20, %v1592_v19 }
  0x83   :  { %v1159_v21 = vsel %vm61_vm2, 1.0, %v1496_v17 }
  0x84   :  { %1251 = vmatprep.mubr.msk.f32.mxu0 %vm152_vm1, %v1159_v21 }
  0x86   :  { %v42_v22 = vpop.permute.xlu0 %41 }
  0x87   :  { %vm62_vm3 = vcmp.eq.s32.totalorder %v42_v22, %v1592_v19 }
  0x88   :  { %v1160_v23 = vsel %vm62_vm3, 1.0, %v1496_v17  ;;  %v101_v27 = vpop.permute.xlu1 %100 }
  0x89   :  { %1252 = vmatmul.mubr.msk.f32.vlgmr.msra.gmra.mrb[0].mxu0 %vm152_vm1, %v1160_v23  ;;  %v144_v28 = vmul.f32 %v1607_v26, %v101_v27 }
  0x8a   :  { %1384 = vmatpush3.bf16.msra.mxu0 %v1556_v8 }
  0x8b   :  { %1385 = vmatprep.subr.bf16.mxu0 %v1494_v7 }
  0x8e   :  { %1387 = vmatpush3.bf16.msra.mxu0 %v1575_v15 }
  0x8f   :  { %1394 = vmatprep.subr.bf16.mxu0 %v1494_v7 }
  0xe0   :  { %v355_v24 = vpop.f32.mrb[0].mxu1 }
  0xe1   :  { %v1273_v25 = vpop.f32.mrb[1].mxu1 }
 0x15c   :  { %v1253_v29 = vpop.f32.mrb[0].mxu0 }
 0x15d   :  { %v243_v30 = vpop.f32.mrb[1].mxu0 }
 0x15e   :  { %v244_v31 = vadd.f32 %v243_v30, %v144_v28 }
 0x160   :  { %v359_v32 = vadd.f32 %v355_v24, %v244_v31 }
 0x162   :  { %1433 = vtanh.f32 %v359_v32 }
 0x16c   :  { %v1434_v33 = vpop.eup %1433 }
 0x16d   :  { %365 = vrot.lane.b32.xlu1 %v1434_v33, %s1497_s23  ;;  %v361_v34 = vmul.f32 0.5, %v1434_v33 }
 0x16f   :  { %v362_v35 = vadd.f32 0.5, %v361_v34 }
 0x171   :  { %v363_v38 = vmul.f32 0.0, %v362_v35 }
 0x1df   :  { %v366_v36 = vpop.permute.xlu1 %365 }
 0x1e0   :  { %v368_v37 = vmul.f32 %v366_v36, %v362_v35 }
 0x1e2   :  { %370 = vrot.lane.b32.xlu0 %v368_v37, %s1498_s24 }
 0x254   :  { %v371_v39 = vpop.permute.xlu0 %370 }
 0x255   :  { %v373_v40 = vadd.f32 %v371_v39, %v363_v38 }
 0x257   :  { %1435 = vtanh.f32 %v373_v40 }
 0x261   :  { %v1436_v41 = vpop.eup %1435 }
 0x262   :  { %376 = vrot.lane.b32.xlu1 %v1436_v41, %s1497_s23 }
 0x266   :  { %105 = vperm.xlu1 %1432, %v90_v42  }
 0x2d4   :  { %v377_v43 = vpop.permute.xlu1 %376 }
 0x2d5   :  { %v379_v44 = vmul.f32 %v377_v43, %v362_v35 }
 0x2d7   :  { %381 = vrot.lane.b32.xlu0 %v379_v44, %s1498_s24 }
 0x2e5   :  { %v106_v46 = vpop.permute.xlu1 %105 }
 0x2e6   :  { %v145_v47 = vmul.f32 %v1607_v26, %v106_v46 }
 0x2e8   :  { %v249_v48 = vadd.f32 %v1253_v29, %v145_v47 }
 0x349   :  { %v382_v45 = vpop.permute.xlu0 %381 }
 0x34a   :  { %1283 = vmatmul.mubr.msk.f32.vlgmr.msra.gmra.mrb[2].mxu1 %vm152_vm1, %v382_v45  ;;  %v92_v45 = vld [vmem:[%s1792_s1 + $0x18] sm:$0xff] }
 0x34b   :  { %1390 = vmatpush3.bf16.msra.mxu1 %v1556_v8  ;;  %1304 = vmatprep.mubr.msk.f32.mxu1 %vm1495_vm0, %v1496_v17 }
 0x34c   :  { %1391 = vmatprep.subr.bf16.mxu1 %v1494_v7 }
 0x34f   :  { %1393 = vmatpush3.bf16.msra.mxu1 %v1575_v15 }
 0x350   :  { %1400 = vmatprep.subr.bf16.mxu1 %v1494_v7 }
 0x41d   :  { %v451_v49 = vpop.f32.mrb[2].mxu1 }
 0x41e   :  { %v455_v50 = vadd.f32 %v451_v49, %v249_v48  ;;  %v1284_v51 = vpop.f32.mrb[3].mxu1 }
 0x420   :  { %1437 = vtanh.f32 %v455_v50 }
 0x42a   :  { %v1438_v52 = vpop.eup %1437 }
 0x42b   :  { %461 = vrot.lane.b32.xlu0 %v1438_v52, %s1497_s23  ;;  %v457_v53 = vmul.f32 0.5, %v1438_v52 }
 0x42d   :  { %v458_v54 = vadd.f32 0.5, %v457_v53 }
 0x42f   :  { %v459_v60 = vmul.f32 %v458_v54, %v373_v40 }
 0x49d   :  { %v462_v55 = vpop.permute.xlu0 %461 }
 0x49e   :  { %v464_v56 = vmul.f32 %v462_v55, %v458_v54 }
 0x4a0   :  { %466 = vrot.lane.b32.xlu1 %v464_v56, %s1498_s24 }
 0x4a4   :  { %44 = vperm.xlu1 %1432, %v29_v57  }
 0x4a8   :  { %50 = vperm.xlu1 %1432, %v31_v58  }
 0x4ac   :  { %56 = vperm.xlu1 %1432, %v33_v59  }
 0x512   :  { %v467_v61 = vpop.permute.xlu1 %466 }
 0x513   :  { %v1636_v62 = vadd.f32 %v467_v61, %v459_v60 }
 0x515   :  { %1439 = vtanh.f32 %v1636_v62 }
 0x51f   :  { %v1440_v63 = vpop.eup %1439 }
 0x520   :  { %472 = vrot.lane.b32.xlu0 %v1440_v63, %s1497_s23 }
 0x523   :  { %v45_v1 = vpop.permute.xlu1 %44 }
 0x524   :  { %vm63_vm4 = vcmp.eq.s32.totalorder %v45_v1, %v1592_v19  ;;  %47 = vperm.xlu0 %1431, %v30_v0   ;;  %v93_v0 = vld [vmem:[%s1792_s1 + $0x20] sm:$0xff] }
 0x525   :  { %v1161_v2 = vsel %vm63_vm4, 1.0, %v1496_v17 }
 0x526   :  { %1254 = vmatprep.mubr.msk.f32.mxu0 %vm152_vm1, %v1161_v2 }
 0x527   :  { %v51_v10 = vpop.permute.xlu1 %50 }
 0x528   :  { %53 = vperm.xlu0 %1431, %v32_v3   ;;  %vm65_vm5 = vcmp.eq.s32.totalorder %v51_v10, %v1592_v19 }
 0x529   :  { %v1163_v14 = vsel %vm65_vm5, 1.0, %v1496_v17 }
 0x52b   :  { %v57_v12 = vpop.permute.xlu1 %56 }
 0x52c   :  { %59 = vperm.xlu0 %1431, %v34_v4   ;;  %vm67_vm7 = vcmp.eq.s32.totalorder %v57_v12, %v1592_v19 }
 0x52d   :  { %v1165_v20 = vsel %vm67_vm7, 1.0, %v1496_v17 }
 0x530   :  { %110 = vperm.xlu0 %1431, %v91_v5  }
 0x592   :  { %v473_v6 = vpop.permute.xlu0 %472 }
 0x593   :  { %v475_v9 = vmul.f32 %v473_v6, %v458_v54 }
 0x595   :  { %477 = vrot.lane.b32.xlu1 %v475_v9, %s1498_s24 }
 0x5a3   :  { %v48_v11 = vpop.permute.xlu0 %47 }
 0x5a4   :  { %vm64_vm6 = vcmp.eq.s32.totalorder %v48_v11, %v1592_v19 }
 0x5a5   :  { %v1162_v13 = vsel %vm64_vm6, 1.0, %v1496_v17 }
 0x5a6   :  { %1255 = vmatmul.mubr.msk.f32.gmra.mrb[2].mxu0 %vm152_vm1, %v1162_v13 }
 0x5a7   :  { %1257 = vmatprep.mubr.msk.f32.mxu0 %vm152_vm1, %v1163_v14  ;;  %v54_v16 = vpop.permute.xlu0 %53 }
 0x5a8   :  { %vm66_vm8 = vcmp.eq.s32.totalorder %v54_v16, %v1592_v19 }
 0x5a9   :  { %v1164_v18 = vsel %vm66_vm8, 1.0, %v1496_v17 }
 0x5aa   :  { %1258 = vmatmul.mubr.msk.f32.gmra.mrb[4].mxu0 %vm152_vm1, %v1164_v18 }
 0x5ab   :  { %1260 = vmatprep.mubr.msk.f32.mxu0 %vm152_vm1, %v1165_v20  ;;  %v60_v21 = vpop.permute.xlu0 %59 }
 0x5ac   :  { %vm68_vm9 = vcmp.eq.s32.totalorder %v60_v21, %v1592_v19 }
 0x5ad   :  { %v1166_v22 = vsel %vm68_vm9, 1.0, %v1496_v17 }
 0x5ae   :  { %1261 = vmatmul.mubr.msk.f32.gmra.mrb[6].mxu0 %vm152_vm1, %v1166_v22 }
 0x5af   :  { %1293 = vmatprep.mubr.msk.f32.mxu0 %vm1495_vm0, %v1496_v17  ;;  %v111_v30 = vpop.permute.xlu0 %110 }
 0x5b0   :  { %v146_v31 = vmul.f32 %v1607_v26, %v111_v30 }
 0x607   :  { %v478_v23 = vpop.permute.xlu1 %477 }
 0x608   :  { %1294 = vmatmul.mubr.msk.f32.vlgmr.msra.gmra.mrb[8].mxu0 %vm152_vm1, %v478_v23 }
 0x609   :  { %1396 = vmatpush3.bf16.msra.mxu0 %v1556_v8  ;;  %1315 = vmatprep.mubr.msk.f32.mxu0 %vm1495_vm0, %v1496_v17 }
 0x60a   :  { %1397 = vmatprep.subr.bf16.mxu0 %v1494_v7 }
 0x60d   :  { %1399 = vmatpush3.bf16.msra.mxu0 %v1575_v15 }
 0x60e   :  { %1406 = vmatprep.subr.bf16.mxu0 %v1494_v7 }
 0x679   :  { %v1256_v19 = vpop.f32.mrb[2].mxu0 }
 0x67a   :  { %v253_v24 = vpop.f32.mrb[3].mxu0 }
 0x67b   :  { %v254_v32 = vadd.f32 %v253_v24, %v146_v31 }
 0x67d   :  { %v1680_v25 = vpop.f32.mrb[4].mxu0 }
 0x67e   :  { %v1682_v27 = vpop.f32.mrb[5].mxu0 }
 0x681   :  { %v1684_v28 = vpop.f32.mrb[6].mxu0 }
 0x682   :  { %v1686_v29 = vpop.f32.mrb[7].mxu0 }
 0x6db   :  { %v547_v33 = vpop.f32.mrb[8].mxu0 }
 0x6dc   :  { %v551_v34 = vadd.f32 %v547_v33, %v254_v32  ;;  %v1295_v35 = vpop.f32.mrb[9].mxu0 }
 0x6de   :  { %1441 = vtanh.f32 %v551_v34 }
 0x6e8   :  { %v1442_v36 = vpop.eup %1441 }
 0x6e9   :  { %557 = vrot.lane.b32.xlu1 %v1442_v36, %s1497_s23  ;;  %v553_v37 = vmul.f32 0.5, %v1442_v36 }
 0x6eb   :  { %v554_v38 = vadd.f32 0.5, %v553_v37 }
 0x6ed   :  { %v555_v41 = vmul.f32 %v554_v38, %v1636_v62 }
 0x75b   :  { %v558_v39 = vpop.permute.xlu1 %557 }
 0x75c   :  { %v560_v40 = vmul.f32 %v558_v39, %v554_v38 }
 0x75e   :  { %562 = vrot.lane.b32.xlu0 %v560_v40, %s1498_s24 }
 0x7d0   :  { %v563_v42 = vpop.permute.xlu0 %562 }
 0x7d1   :  { %v565_v43 = vadd.f32 %v563_v42, %v555_v41 }
 0x7d3   :  { %1443 = vtanh.f32 %v565_v43 }
 0x7dd   :  { %v1444_v44 = vpop.eup %1443 }
 0x7de   :  { %568 = vrot.lane.b32.xlu1 %v1444_v44, %s1497_s23 }
 0x7e2   :  { %115 = vperm.xlu1 %1432, %v92_v45  }
 0x850   :  { %v569_v46 = vpop.permute.xlu1 %568 }
 0x851   :  { %v571_v47 = vmul.f32 %v569_v46, %v554_v38 }
 0x853   :  { %573 = vrot.lane.b32.xlu0 %v571_v47, %s1498_s24 }
 0x861   :  { %v116_v49 = vpop.permute.xlu1 %115 }
 0x862   :  { %v147_v50 = vmul.f32 %v1607_v26, %v116_v49 }
 0x864   :  { %v259_v51 = vadd.f32 %v1256_v19, %v147_v50  ;;  %v94_v19 = vld [vmem:[%s1792_s1 + $0x28] sm:$0xff] }
 0x8c5   :  { %v574_v48 = vpop.permute.xlu0 %573 }
 0x8c6   :  { %1305 = vmatmul.mubr.msk.f32.vlgmr.msra.gmra.mrb[4].mxu1 %vm152_vm1, %v574_v48 }
 0x8c7   :  { %1402 = vmatpush3.bf16.msra.mxu1 %v1556_v8  ;;  %1326 = vmatprep.mubr.msk.f32.mxu1 %vm1495_vm0, %v1496_v17 }
 0x8c8   :  { %1403 = vmatprep.subr.bf16.mxu1 %v1494_v7 }
 0x8cb   :  { %1405 = vmatpush3.bf16.msra.mxu1 %v1575_v15 }
 0x8cc   :  { %1412 = vmatprep.subr.bf16.mxu1 %v1494_v7 }
 0x999   :  { %v643_v52 = vpop.f32.mrb[4].mxu1 }
 0x99a   :  { %v647_v53 = vadd.f32 %v643_v52, %v259_v51  ;;  %v1306_v54 = vpop.f32.mrb[5].mxu1 }
 0x99c   :  { %1445 = vtanh.f32 %v647_v53 }
 0x9a6   :  { %v1446_v55 = vpop.eup %1445 }
 0x9a7   :  { %653 = vrot.lane.b32.xlu0 %v1446_v55, %s1497_s23  ;;  %v649_v56 = vmul.f32 0.5, %v1446_v55 }
 0x9a9   :  { %v650_v57 = vadd.f32 0.5, %v649_v56 }
 0x9ab   :  { %v651_v60 = vmul.f32 %v650_v57, %v565_v43 }
 0xa19   :  { %v654_v58 = vpop.permute.xlu0 %653 }
 0xa1a   :  { %v656_v59 = vmul.f32 %v654_v58, %v650_v57 }
 0xa1c   :  { %658 = vrot.lane.b32.xlu1 %v656_v59, %s1498_s24 }
 0xa8e   :  { %v659_v61 = vpop.permute.xlu1 %658 }
 0xa8f   :  { %v661_v62 = vadd.f32 %v659_v61, %v651_v60 }
 0xa91   :  { %1447 = vtanh.f32 %v661_v62 }
 0xa9b   :  { %v1448_v63 = vpop.eup %1447 }
 0xa9c   :  { %664 = vrot.lane.b32.xlu0 %v1448_v63, %s1497_s23 }
 0xaa0   :  { %120 = vperm.xlu0 %1431, %v93_v0  }
 0xb0e   :  { %v665_v1 = vpop.permute.xlu0 %664 }
 0xb0f   :  { %v667_v2 = vmul.f32 %v665_v1, %v650_v57 }
 0xb11   :  { %669 = vrot.lane.b32.xlu1 %v667_v2, %s1498_s24 }
 0xb1f   :  { %v121_v4 = vpop.permute.xlu0 %120 }
 0xb20   :  { %v148_v5 = vmul.f32 %v1607_v26, %v121_v4 }
 0xb22   :  { %v264_v6 = vadd.f32 %v1682_v27, %v148_v5 }
 0xb83   :  { %v670_v3 = vpop.permute.xlu1 %669 }
 0xb84   :  { %1316 = vmatmul.mubr.msk.f32.vlgmr.msra.gmra.mrb[10].mxu0 %vm152_vm1, %v670_v3 }
 0xb85   :  { %1408 = vmatpush3.bf16.msra.mxu0 %v1556_v8  ;;  %1337 = vmatprep.mubr.msk.f32.mxu0 %vm1495_vm0, %v1496_v17 }
 0xb86   :  { %1409 = vmatprep.subr.bf16.mxu0 %v1494_v7 }
 0xb89   :  { %1411 = vmatpush3.bf16.msra.mxu0 %v1575_v15 }
 0xb8a   :  { %1418 = vmatprep.subr.bf16.mxu0 %v1494_v7 }
 0xc57   :  { %v739_v9 = vpop.f32.mrb[10].mxu0 }
 0xc58   :  { %v743_v10 = vadd.f32 %v739_v9, %v264_v6  ;;  %v1317_v11 = vpop.f32.mrb[11].mxu0 }
 0xc5a   :  { %1449 = vtanh.f32 %v743_v10 }
 0xc64   :  { %v1450_v12 = vpop.eup %1449 }
 0xc65   :  { %749 = vrot.lane.b32.xlu1 %v1450_v12, %s1497_s23  ;;  %v745_v13 = vmul.f32 0.5, %v1450_v12 }
 0xc67   :  { %v746_v14 = vadd.f32 0.5, %v745_v13 }
 0xc69   :  { %v747_v20 = vmul.f32 %v746_v14, %v661_v62 }
 0xcd7   :  { %v750_v16 = vpop.permute.xlu1 %749 }
 0xcd8   :  { %v752_v18 = vmul.f32 %v750_v16, %v746_v14 }
 0xcda   :  { %754 = vrot.lane.b32.xlu0 %v752_v18, %s1498_s24  ;;  %v1054_v18 = vld [vmem:[%s1796_s5 + $0x10] sm:$0xff] }
 0xd4c   :  { %v755_v21 = vpop.permute.xlu0 %754 }
 0xd4d   :  { %v757_v22 = vadd.f32 %v755_v21, %v747_v20  ;;  %v1055_v21 = vld [vmem:[%s1796_s5 + $0x18] sm:$0xff] }
 0xd4f   :  { %1451 = vtanh.f32 %v757_v22 }
 0xd59   :  { %v1452_v23 = vpop.eup %1451 }
 0xd5a   :  { %760 = vrot.lane.b32.xlu1 %v1452_v23, %s1497_s23 }
 0xd5e   :  { %125 = vperm.xlu1 %1432, %v94_v19  }
 0xdcc   :  { %v761_v24 = vpop.permute.xlu1 %760 }
 0xdcd   :  { %v763_v27 = vmul.f32 %v761_v24, %v746_v14 }
 0xdcf   :  { %765 = vrot.lane.b32.xlu0 %v763_v27, %s1498_s24 }
 0xddd   :  { %v126_v31 = vpop.permute.xlu1 %125 }
 0xdde   :  { %v149_v32 = vmul.f32 %v1607_v26, %v126_v31 }
 0xde0   :  { %v269_v33 = vadd.f32 %v1680_v25, %v149_v32  ;;  %v95_v25 = vld [vmem:[%s1792_s1 + $0x30] sm:$0xff] }
 0xe41   :  { %v766_v30 = vpop.permute.xlu0 %765 }
 0xe42   :  { %1327 = vmatmul.mubr.msk.f32.vlgmr.msra.gmra.mrb[6].mxu1 %vm152_vm1, %v766_v30  ;;  %v1183_v30 = vld [vmem:[%s1797_s6] ss:$0 sm:$0xff] }
 0xe43   :  { %1414 = vmatpush3.bf16.msra.mxu1 %v1556_v8  ;;  %1348 = vmatprep.mubr.msk.f32.mxu1 %vm1495_vm0, %v1496_v17 }
 0xe44   :  { %1415 = vmatprep.subr.bf16.mxu1 %v1494_v7 }
 0xe47   :  { %1417 = vmatpush3.bf16.msra.mxu1 %v1575_v15 }
 0xf15   :  { %v835_v34 = vpop.f32.mrb[6].mxu1 }
 0xf16   :  { %v839_v35 = vadd.f32 %v835_v34, %v269_v33  ;;  %v1328_v36 = vpop.f32.mrb[7].mxu1 }
 0xf18   :  { %1453 = vtanh.f32 %v839_v35 }
 0xf22   :  { %v1454_v37 = vpop.eup %1453 }
 0xf23   :  { %845 = vrot.lane.b32.xlu0 %v1454_v37, %s1497_s23  ;;  %v841_v8 = vmul.f32 0.5, %v1454_v37 }
 0xf25   :  { %v842_v38 = vadd.f32 0.5, %v841_v8 }
 0xf27   :  { %v843_v41 = vmul.f32 %v842_v38, %v757_v22  ;;  %v1422_v22 = vpack.c.bf16 %v1055_v21, %v1054_v18 }
 0xf95   :  { %v846_v39 = vpop.permute.xlu0 %845 }
 0xf96   :  { %v848_v40 = vmul.f32 %v846_v39, %v842_v38 }
 0xf98   :  { %850 = vrot.lane.b32.xlu1 %v848_v40, %s1498_s24 }
0x100a   :  { %v851_v15 = vpop.permute.xlu1 %850 }
0x100b   :  { %v853_v42 = vadd.f32 %v851_v15, %v843_v41 }
0x100d   :  { %1455 = vtanh.f32 %v853_v42 }
0x1017   :  { %v1456_v43 = vpop.eup %1455 }
0x1018   :  { %856 = vrot.lane.b32.xlu0 %v1456_v43, %s1497_s23 }
0x101c   :  { %130 = vperm.xlu0 %1431, %v95_v25  }
0x108a   :  { %v857_v44 = vpop.permute.xlu0 %856 }
0x108b   :  { %v859_v45 = vmul.f32 %v857_v44, %v842_v38 }
0x108d   :  { %861 = vrot.lane.b32.xlu1 %v859_v45, %s1498_s24 }
0x109b   :  { %v131_v47 = vpop.permute.xlu0 %130 }
0x109c   :  { %v150_v48 = vmul.f32 %v1607_v26, %v131_v47 }
0x109e   :  { %v274_v49 = vadd.f32 %v1686_v29, %v150_v48  ;;  %v96_v29 = vld [vmem:[%s1792_s1 + $0x38] sm:$0xff] }
0x10ff   :  { %v862_v46 = vpop.permute.xlu1 %861 }
0x1100   :  { %1338 = vmatmul.mubr.msk.f32.vlgmr.msra.gmra.mrb[12].mxu0 %vm152_vm1, %v862_v46 }
0x1101   :  { %1359 = vmatprep.mubr.msk.f32.mxu0 %vm1495_vm0, %v1496_v17 }
0x11d3   :  { %v931_v50 = vpop.f32.mrb[12].mxu0 }
0x11d4   :  { %v935_v51 = vadd.f32 %v931_v50, %v274_v49  ;;  %v1339_v52 = vpop.f32.mrb[13].mxu0 }
0x11d6   :  { %1457 = vtanh.f32 %v935_v51 }
0x11e0   :  { %v1458_v53 = vpop.eup %1457 }
0x11e1   :  { %941 = vrot.lane.b32.xlu1 %v1458_v53, %s1497_s23  ;;  %v937_v54 = vmul.f32 0.5, %v1458_v53 }
0x11e3   :  { %v938_v55 = vadd.f32 0.5, %v937_v54 }
0x11e5   :  { %v939_v58 = vmul.f32 %v938_v55, %v853_v42 }
0x1253   :  { %v942_v56 = vpop.permute.xlu1 %941 }
0x1254   :  { %v944_v57 = vmul.f32 %v942_v56, %v938_v55 }
0x1256   :  { %946 = vrot.lane.b32.xlu0 %v944_v57, %s1498_s24 }
0x12c8   :  { %v947_v17 = vpop.permute.xlu0 %946 }
0x12c9   :  { %v949_v59 = vadd.f32 %v947_v17, %v939_v58 }
0x12cb   :  { %1459 = vtanh.f32 %v949_v59 }
0x12d5   :  { %v1460_v60 = vpop.eup %1459 }
0x12d6   :  { %952 = vrot.lane.b32.xlu1 %v1460_v60, %s1497_s23 }
0x12da   :  { %135 = vperm.xlu1 %1432, %v96_v29  }
0x1348   :  { %v953_v61 = vpop.permute.xlu1 %952 }
0x1349   :  { %v955_v62 = vmul.f32 %v953_v61, %v938_v55 }
0x134b   :  { %957 = vrot.lane.b32.xlu0 %v955_v62, %s1498_s24 }
0x1359   :  { %v136_v0 = vpop.permute.xlu1 %135 }
0x135a   :  { %v151_v1 = vmul.f32 %v1607_v26, %v136_v0  ;;  %v1052_v26 = vld [vmem:[%s1796_s5] sm:$0xff] }
0x135c   :  { %v279_v2 = vadd.f32 %v1684_v28, %v151_v1  ;;  %v1053_v28 = vld [vmem:[%s1796_s5 + $0x8] sm:$0xff]  ;;  %s1499_s5 = smov [#allocation2]  }
0x135d   :  { %v1419_v20 = vpack.c.bf16 %v1053_v28, %v1052_v26 }
0x135f   :  { %1420 = vmatpush3.bf16.msra.mxu0 %v1419_v20 }
0x1360   :  { %1421 = vmatprep.subr.bf16.mxu0 %v1494_v7 }
0x1363   :  { %1423 = vmatpush3.bf16.msra.mxu0 %v1422_v22 }
0x13bd   :  { %v958_v63 = vpop.permute.xlu0 %957 }
0x13be   :  { %1349 = vmatmul.mubr.msk.f32.vlgmr.msra.gmra.mrb[8].mxu1 %vm152_vm1, %v958_v63 }
0x1491   :  { %v1027_v3 = vpop.f32.mrb[8].mxu1 }
0x1492   :  { %v1031_v4 = vadd.f32 %v1027_v3, %v279_v2  ;;  %v1350_v5 = vpop.f32.mrb[9].mxu1 }
0x1494   :  { %1461 = vtanh.f32 %v1031_v4 }
0x149e   :  { %v1462_v6 = vpop.eup %1461 }
0x149f   :  { %1037 = vrot.lane.b32.xlu0 %v1462_v6, %s1497_s23  ;;  %v1033_v9 = vmul.f32 0.5, %v1462_v6 }
0x14a1   :  { %v1034_v10 = vadd.f32 0.5, %v1033_v9 }
0x14a3   :  { %v1035_v13 = vmul.f32 %v1034_v10, %v949_v59 }
0x1511   :  { %v1038_v11 = vpop.permute.xlu0 %1037 }
0x1512   :  { %v1040_v12 = vmul.f32 %v1038_v11, %v1034_v10 }
0x1514   :  { %1042 = vrot.lane.b32.xlu1 %v1040_v12, %s1498_s24 }
0x1586   :  { %v1043_v14 = vpop.permute.xlu1 %1042 }
0x1587   :  { %v1045_v16 = vadd.f32 %v1043_v14, %v1035_v13 }
0x1589   :  { %1463 = vtanh.f32 %v1045_v16 }
0x1593   :  { %v1464_v23 = vpop.eup %1463 }
0x1594   :  { %1048 = vrot.lane.b32.xlu0 %v1464_v23, %s1497_s23  ;;  %s1151_s23 = sshll.u32 %s1499_s5, 4  ;;  %s1152_s23 = int_to_ptr.vmem [resolvable:$true] %s1151_s23 }
0x1595   :  { %p1474_p1 = scmp.lt.s32.totalorder %s1152_s23, %s1152_s23 }
0x1606   :  { %v1049_v19 = vpop.permute.xlu0 %1048 }
0x1607   :  { %v1051_v24 = vmul.f32 %v1049_v19, %v1034_v10 }
0x1609   :  { %1064 = vrot.lane.b32.xlu1 %v1051_v24, %s1498_s24  ;;  %s1469_s24 = scalar_lea.vmem %s1152_s23, 128 }
0x160a   :  { %p1470_p0 = scmp.ne.s32.totalorder %s1152_s23, %s1469_s24  ;;  %p1475_p2 = scmp.lt.s32.totalorder %s1469_s24, %s1469_s24 }
0x160c   :  { %p1476_p3 = por %p1475_p2, %p1474_p1 }
0x160e   :  { %p1477_p4 = pnand %p1476_p3, %p1470_p0 }
0x167b   :  { %v1065_v27 = vpop.permute.xlu1 %1064 }
0x167c   :  { %1360 = vmatmul.mubr.msk.f32.vlgmr.msra.gmra.mrb[14].mxu0 %vm152_vm1, %v1065_v27 }
0x174f   :  { %v1134_v31 = vpop.f32.mrb[14].mxu0 }
0x1750   :  { %v1135_v32 = vadd.f32 %v1183_v30, %v1134_v31  ;;  %v1361_v33 = vpop.f32.mrb[15].mxu0 }
0x1752   :  { %v1185_v34 = vmul.f32 -1.442695, %v1135_v32 }
0x1754   :  { %1465 = vpow2.f32 %v1185_v34 }
0x175e   :  { %v1466_v7 = vpop.eup %1465 }
0x175f   :  { %v1141_v35 = vadd.f32 1.0, %v1466_v7 }
0x1761   :  { %1467 = vrcp.f32 %v1141_v35 }
0x176b   :  { %v1468_v36 = vpop.eup %1467 }
0x176c   :  { %1144 = vst [vmem:[#allocation2] sm:$0xff] %v1468_v36 }
0x176d   :  { %1480 = shalt.err (!%p1477_p4)
}
0x176e   :  { %s1481_s12 = scalar_lea.hbm %s1798_s7, 128 }
0x176f   :  { %p1482_p5 = scmp.ne.s32.totalorder %s1798_s7, %s1481_s12  ;;  %p1485_p6 = scmp.lt.u32.totalorder %s1481_s12, %s1798_s7 }
0x1771   :  { %p1487_p7 = pnand %p1485_p6, %p1482_p5 }
0x1773   :  { %1490 = shalt.err (!%p1487_p7)
}
0x1774   :  { %1154 = dma.vmem_to_hbm [thread:$0]  %s1152_s23, 128, %s1798_s7, [#allocation3]  }
0x1775   :  { %1491 = dma.done.wait [#allocation3], 128  }
0x1776   :  { %1492 = vsyncadd [#allocation3], 4294967168 }
0x1777   :  { %1158 = vsyncpa [#allocation3], 1 }

</bundles_post_ra>
